<compile_context>
chip_gen: v7x
topology: tpu7x:2x2x1
jax: 0.10.0
libtpu: 0.0.40
codegen_flags: <defaults>
</compile_context>

<pallas_src>
import functools

import jax
import jax.numpy as jnp
from jax import lax
from jax.experimental import pallas as pl
from jax.experimental.pallas import tpu as pltpu

_EPS = 1e-5  # BatchNorm2d default eps


def _bn_whole_fused(v):
    """BatchNorm2d(num_features=1), training mode, over the whole tensor.

    gamma=1, beta=0 (PyTorch default init), biased variance.  Single traversal
    producing both partials (sum and sum-of-squares); var = E[x^2] - mean^2 with a
    max(., 0) guard against cancellation.  Accumulation stays in f32.
    """
    inv_n = 1.0 / float(v.size)
    s = jnp.sum(v)
    ss = jnp.sum(v * v)
    mean = s * inv_n
    var = jnp.maximum(ss * inv_n - mean * mean, 0.0)
    return (v - mean) * lax.rsqrt(var + _EPS)


def _mixer_kernel(x_ref, tw_ref, tb_ref, fw1_ref, fb1_ref, fw2_ref, fb2_ref,
                  ow_ref, ob_ref, out_ref, act_ref, *, batch, length):
    """One grid step = one MixerLayer (per-layer weights pipelined per step).

    Blocks seen inside the kernel at grid step i:
      x_ref    (B*L, F)   input slab (constant block index: fetched once)
      tw_ref   (1, L, L)  TimeMixer weight, layer i
      tb_ref   (1, L, 1)  TimeMixer bias      (lane-broadcast in the add)
      fw1_ref  (1, F, H)  FeatMixer lin_1 weight (pre-transposed)
      fb1_ref  (1, 1, H)  FeatMixer lin_1 bias (sublane-broadcast in the add)
      fw2_ref  (1, H, F)  FeatMixer lin_2 weight (pre-transposed)
      fb2_ref  (1, 1, F)  FeatMixer lin_2 bias
      ow_ref   (T, L)     OutLayer weight (constant block index -> resident)
      ob_ref   (T, 1)     OutLayer bias
      out_ref  (B*T, F)   forecast, written only at the last grid step
      act_ref  (B*L, F)   f32 activation carried across grid steps (VMEM scratch)
    """
    i = pl.program_id(0)

    @pl.when(i == 0)
    def _():
        act_ref[...] = x_ref[...].astype(jnp.float32)

    x = act_ref[...]

    # ---- Time mixing: static per-batch (L,L)x(L,F) MXU dots (no kron(I_B, W)) ----
    y = _bn_whole_fused(x)
    tw = tw_ref[0]                         # (L, L)
    tb = tb_ref[0]                         # (L, 1) -> broadcast over lanes
    parts = []
    for b in range(batch):                 # static, tiny B; slices are sublane-aligned
        yb = y[b * length:(b + 1) * length, :]
        zb = jnp.dot(tw, yb, preferred_element_type=jnp.float32)
        parts.append(jnp.maximum(zb + tb, 0.0))
    x = x + jnp.concatenate(parts, axis=0)

    # ---- Feature mixing: 2D MLP over the feature (lane) axis ----
    y = _bn_whole_fused(x)
    h = jnp.maximum(
        jnp.dot(y, fw1_ref[0], preferred_element_type=jnp.float32) + fb1_ref[0],
        0.0)
    z = jnp.dot(h, fw2_ref[0], preferred_element_type=jnp.float32) + fb2_ref[0]
    x = x + z

    act_ref[...] = x

    # ---- Temporal projection (OutLayer) on the final representation ----
    @pl.when(i == pl.num_programs(0) - 1)
    def _():
        ow = ow_ref[...]                   # (T, L)
        ob = ob_ref[...]                   # (T, 1)
        outs = []
        for b in range(batch):
            xb = x[b * length:(b + 1) * length, :]
            outs.append(jnp.dot(ow, xb, preferred_element_type=jnp.float32) + ob)
        out_ref[...] = jnp.concatenate(outs, axis=0).astype(out_ref.dtype)


def _vmem_limit_bytes():
    """Generation-aware scoped-VMEM limit: ~75% of physical, >= 16 MiB."""
    try:
        cap = int(pltpu.get_tpu_info().vmem_capacity_bytes)
    except Exception:
        cap = 64 * 1024 * 1024             # conservative (v7x per-TC) fallback
    return max(16 * 1024 * 1024, (cap * 3) // 4)


def multi_mixer_forward(x, params):
    B, L, F = x.shape
    N = params['time_w'].shape[0]
    H = params['feat_w1'].shape[1]
    T = params['out_w'].shape[0]
    BL, BT = B * L, B * T

    # Feature-MLP weights pre-transposed once in the wrapper (contracting dim
    # leading) so no transpose is emitted inside the per-layer body.  Biases are
    # passed UNreplicated; the kernel adds broadcast them on the VPU.
    fw1t = jnp.transpose(params['feat_w1'], (0, 2, 1))   # (N, F, H)
    fw2t = jnp.transpose(params['feat_w2'], (0, 2, 1))   # (N, H, F)

    x2 = x.reshape(BL, F)   # leading-dim merge only: lane layout unchanged

    kernel = functools.partial(_mixer_kernel, batch=B, length=L)

    grid_spec = pltpu.PrefetchScalarGridSpec(
        num_scalar_prefetch=0,
        grid=(N,),   # one grid step per mixer layer: per-layer weights are
                     # auto double-buffered -> O(2 layers) weight residency.
        in_specs=[
            pl.BlockSpec((BL, F), lambda i: (0, 0)),       # x (fetched once)
            pl.BlockSpec((1, L, L), lambda i: (i, 0, 0)),  # time_w[i]
            pl.BlockSpec((1, L, 1), lambda i: (i, 0, 0)),  # time_b[i]
            pl.BlockSpec((1, F, H), lambda i: (i, 0, 0)),  # feat_w1^T[i]
            pl.BlockSpec((1, 1, H), lambda i: (i, 0, 0)),  # feat_b1[i]
            pl.BlockSpec((1, H, F), lambda i: (i, 0, 0)),  # feat_w2^T[i]
            pl.BlockSpec((1, 1, F), lambda i: (i, 0, 0)),  # feat_b2[i]
            pl.BlockSpec((T, L), lambda i: (0, 0)),        # out_w (resident)
            pl.BlockSpec((T, 1), lambda i: (0, 0)),        # out_b (resident)
        ],
        out_specs=pl.BlockSpec((BT, F), lambda i: (0, 0)),
        scratch_shapes=[pltpu.VMEM((BL, F), jnp.float32)],  # carried activation
    )

    weight_elems = (params['time_w'].size + params['time_b'].size + fw1t.size
                    + params['feat_b1'].size + fw2t.size + params['feat_b2'].size
                    + params['out_w'].size + params['out_b'].size)
    cost = pl.CostEstimate(
        flops=int(N * (2 * B * L * L * F + 4 * B * L * F * H) + 2 * B * T * L * F),
        transcendentals=int(2 * N),
        bytes_accessed=int(4 * (BL * F + weight_elems + BT * F)))

    out2 = pl.pallas_call(
        kernel,
        out_shape=jax.ShapeDtypeStruct((BT, F), x.dtype),
        grid_spec=grid_spec,
        compiler_params=pltpu.CompilerParams(
            dimension_semantics=("arbitrary",),   # layers are sequential
            vmem_limit_bytes=_vmem_limit_bytes()),
        cost_estimate=cost,
    )(x2, params['time_w'], params['time_b'], fw1t, params['feat_b1'],
      fw2t, params['feat_b2'], params['out_w'], params['out_b'])
    return out2.reshape(B, T, F)   # leading-dim split only: free in the wrapper


def init_params(key, input_length, forecast_length, no_feats, hidden, no_mixer_layers):
    """Deterministic PyTorch-Linear-style init: U(-1/sqrt(fan_in), 1/sqrt(fan_in))."""
    L, T, F, H, N = input_length, forecast_length, no_feats, hidden, no_mixer_layers
    keys = jax.random.split(key, 8)

    def uni(k, shape, fan_in):
        b = 1.0 / float(fan_in) ** 0.5
        return jax.random.uniform(k, shape, jnp.float32, -b, b)

    return dict(
        time_w=uni(keys[0], (N, L, L), L),      # TimeMixer lin weight (out=L, in=L)
        time_b=uni(keys[1], (N, L, 1), L),      # bias, stored (L, 1)
        feat_w1=uni(keys[2], (N, H, F), F),     # FeatMixer lin_1 weight (out=H, in=F)
        feat_b1=uni(keys[3], (N, 1, H), F),
        feat_w2=uni(keys[4], (N, F, H), H),     # FeatMixer lin_2 weight (out=F, in=H)
        feat_b2=uni(keys[5], (N, 1, F), H),
        out_w=uni(keys[6], (T, L), L),          # OutLayer weight (out=T, in=L)
        out_b=uni(keys[7], (T, 1), L),
    )


def _bn_ref(v):
    # Two-pass reference BN (literal PyTorch-style mean then centered variance).
    mean = jnp.mean(v)
    var = jnp.mean((v - mean) * (v - mean))
    return (v - mean) * lax.rsqrt(var + _EPS)


def reference_forward(x, params):
    """Pure-JAX reference mirroring the PyTorch forward (train mode, dropout=0)."""
    n = params['time_w'].shape[0]
    for i in range(n):
        y = _bn_ref(x)
        z = jnp.einsum('tl,blf->btf', params['time_w'][i], y) + params['time_b'][i]
        x = x + jnp.maximum(z, 0.0)
        y = _bn_ref(x)
        h = jnp.maximum(jnp.einsum('blf,jf->blj', y, params['feat_w1'][i])
                        + params['feat_b1'][i], 0.0)
        z = jnp.einsum('blj,fj->blf', h, params['feat_w2'][i]) + params['feat_b2'][i]
        x = x + z
    return jnp.einsum('tl,blf->btf', params['out_w'], x) + params['out_b']


if __name__ == "__main__":
    # Small config consistent with the module's constructor.
    B = 2                      # batch
    input_length = 16          # L (time)
    forecast_length = 4        # T
    no_feats = 8               # F
    hidden = 32                # feat_mixing_hidden_channels
    no_mixer_layers = 2
    # dropout = 0.0 (identity; see TODO above)

    key = jax.random.PRNGKey(0)
    kx, kp = jax.random.split(key)
    x = jax.random.normal(kx, (B, input_length, no_feats), dtype=jnp.float32)
    params = init_params(kp, input_length, forecast_length, no_feats, hidden,
                         no_mixer_layers)

    out = multi_mixer_forward(x, params)
    out = jax.block_until_ready(out)

    ref = jax.block_until_ready(reference_forward(x, params))
    assert out.shape == (B, forecast_length, no_feats), out.shape
    assert jnp.allclose(out, ref, atol=3e-4, rtol=3e-4), \
        f"max abs err {float(jnp.max(jnp.abs(out - ref)))}"

    print("KERNEL_OK")
</pallas_src>

<mosaic_0001>
module attributes {stable_mosaic.version = 11 : i64} {
  func.func @_mixer_kernel(%arg0: i32, %arg1: memref<32x8xf32, #tpu.memory_space<vmem>>, %arg2: memref<1x16x16xf32, #tpu.memory_space<vmem>>, %arg3: memref<1x16x1xf32, #tpu.memory_space<vmem>>, %arg4: memref<1x8x32xf32, #tpu.memory_space<vmem>>, %arg5: memref<1x1x32xf32, #tpu.memory_space<vmem>>, %arg6: memref<1x32x8xf32, #tpu.memory_space<vmem>>, %arg7: memref<1x1x8xf32, #tpu.memory_space<vmem>>, %arg8: memref<4x16xf32, #tpu.memory_space<vmem>>, %arg9: memref<4x1xf32, #tpu.memory_space<vmem>>, %arg10: memref<8x8xf32, #tpu.memory_space<vmem>>, %arg11: memref<32x8xf32, #tpu.memory_space<vmem>>) attributes {dimension_semantics = [#tpu.dimension_semantics<arbitrary>], iteration_bounds = array<i64: 2>, scalar_prefetch = 0 : i64, scratch_operands = 1 : i64, tpu.core_type = #tpu.core_type<tc>, window_params = [{pipeline_mode = #tpu.pipeline_mode<synchronous>, transform_indices = @transform_0, window_bounds = array<i64: 32, 8>}, {transform_indices = @transform_1, window_bounds = array<i64: 1, 16, 16>}, {transform_indices = @transform_2, window_bounds = array<i64: 1, 16, 1>}, {transform_indices = @transform_3, window_bounds = array<i64: 1, 8, 32>}, {transform_indices = @transform_4, window_bounds = array<i64: 1, 1, 32>}, {transform_indices = @transform_5, window_bounds = array<i64: 1, 32, 8>}, {transform_indices = @transform_6, window_bounds = array<i64: 1, 1, 8>}, {pipeline_mode = #tpu.pipeline_mode<synchronous>, transform_indices = @transform_7, window_bounds = array<i64: 4, 16>}, {pipeline_mode = #tpu.pipeline_mode<synchronous>, transform_indices = @transform_8, window_bounds = array<i64: 4, 1>}, {pipeline_mode = #tpu.pipeline_mode<synchronous>, transform_indices = @transform_9, window_bounds = array<i64: 8, 8>}]} {
    %c0_i32 = arith.constant 0 : i32
    %0 = arith.cmpi eq, %arg0, %c0_i32 : i32
    %1 = arith.extui %0 : i1 to i32
    %c0_i32_0 = arith.constant 0 : i32
    %2 = arith.cmpi ne, %1, %c0_i32_0 : i32
    scf.if %2 {
      %c0_41 = arith.constant 0 : index
      %c0_42 = arith.constant 0 : index
      %83 = vector.load %arg1[%c0_41, %c0_42] : memref<32x8xf32, #tpu.memory_space<vmem>>, vector<32x8xf32>
      %c0_43 = arith.constant 0 : index
      %c0_44 = arith.constant 0 : index
      %84 = vector.load %arg11[%c0_43, %c0_44] : memref<32x8xf32, #tpu.memory_space<vmem>>, vector<32x8xf32>
      tpu.vector_store %arg11[%c0_43, %c0_44], %83 {strides = array<i32>} : memref<32x8xf32, #tpu.memory_space<vmem>>, vector<32x8xf32>,
    } else {
    }
    %c0 = arith.constant 0 : index
    %c0_1 = arith.constant 0 : index
    %3 = vector.load %arg11[%c0, %c0_1] : memref<32x8xf32, #tpu.memory_space<vmem>>, vector<32x8xf32>
    %4 = vector.shape_cast %3 : vector<32x8xf32> to vector<1x32x8xf32>
    %cst = arith.constant dense<0.000000e+00> : vector<1xf32>
    %5 = vector.multi_reduction <add>, %4, %cst [1, 2] : vector<1x32x8xf32> to vector<1xf32>
    %6 = vector.shape_cast %5 : vector<1xf32> to vector<1x1x1xf32>
    %7 = vector.extract %6[0, 0, 0] : f32 from vector<1x1x1xf32>
    %8 = arith.mulf %3, %3 : vector<32x8xf32>
    %9 = vector.shape_cast %8 : vector<32x8xf32> to vector<1x32x8xf32>
    %cst_2 = arith.constant dense<0.000000e+00> : vector<1xf32>
    %10 = vector.multi_reduction <add>, %9, %cst_2 [1, 2] : vector<1x32x8xf32> to vector<1xf32>
    %11 = vector.shape_cast %10 : vector<1xf32> to vector<1x1x1xf32>
    %12 = vector.extract %11[0, 0, 0] : f32 from vector<1x1x1xf32>
    %cst_3 = arith.constant 3.906250e-03 : f32
    %13 = arith.mulf %7, %cst_3 : f32
    %cst_4 = arith.constant 3.906250e-03 : f32
    %14 = arith.mulf %12, %cst_4 : f32
    %15 = arith.mulf %13, %13 : f32
    %16 = arith.subf %14, %15 : f32
    %cst_5 = arith.constant 0.000000e+00 : f32
    %17 = arith.maximumf %16, %cst_5 : f32
    %18 = vector.broadcast %13 : f32 to vector<32x8xf32>
    %19 = arith.subf %3, %18 : vector<32x8xf32>
    %cst_6 = arith.constant 9.99999974E-6 : f32
    %20 = arith.addf %17, %cst_6 : f32
    %21 = math.rsqrt %20 : f32
    %22 = vector.broadcast %21 : f32 to vector<32x8xf32>
    %23 = arith.mulf %19, %22 : vector<32x8xf32>
    %c0_7 = arith.constant 0 : index
    %c0_8 = arith.constant 0 : index
    %c0_9 = arith.constant 0 : index
    %24 = vector.load %arg2[%c0_7, %c0_8, %c0_9] : memref<1x16x16xf32, #tpu.memory_space<vmem>>, vector<1x16x16xf32>
    %25 = vector.shape_cast %24 : vector<1x16x16xf32> to vector<16x16xf32>
    %c0_10 = arith.constant 0 : index
    %c0_11 = arith.constant 0 : index
    %c0_12 = arith.constant 0 : index
    %26 = vector.load %arg3[%c0_10, %c0_11, %c0_12] : memref<1x16x1xf32, #tpu.memory_space<vmem>>, vector<1x16x1xf32>
    %27 = vector.shape_cast %26 : vector<1x16x1xf32> to vector<16x1xf32>
    %28 = vector.extract_strided_slice %23 {offsets = [0, 0], sizes = [16, 8], strides = [1, 1]} : vector<32x8xf32> to vector<16x8xf32>
    %cst_13 = arith.constant dense<0.000000e+00> : vector<16x8xf32>
    %29 = tpu.matmul %25, %28, %cst_13 {dimension_numbers = #tpu.dot_dimension_numbers<[1], [0], [0], [1], [0, 0, 1, 1], [], []>} : vector<16x16xf32>, vector<16x8xf32>, vector<16x8xf32> -> vector<16x8xf32>
    %30 = vector.broadcast %27 : vector<16x1xf32> to vector<16x8xf32>
    %31 = arith.addf %29, %30 : vector<16x8xf32>
    %cst_14 = arith.constant 0.000000e+00 : f32
    %32 = vector.broadcast %cst_14 : f32 to vector<16x8xf32>
    %33 = arith.maximumf %31, %32 : vector<16x8xf32>
    %34 = vector.extract_strided_slice %23 {offsets = [16, 0], sizes = [16, 8], strides = [1, 1]} : vector<32x8xf32> to vector<16x8xf32>
    %cst_15 = arith.constant dense<0.000000e+00> : vector<16x8xf32>
    %35 = tpu.matmul %25, %34, %cst_15 {dimension_numbers = #tpu.dot_dimension_numbers<[1], [0], [0], [1], [0, 0, 1, 1], [], []>} : vector<16x16xf32>, vector<16x8xf32>, vector<16x8xf32> -> vector<16x8xf32>
    %36 = vector.broadcast %27 : vector<16x1xf32> to vector<16x8xf32>
    %37 = arith.addf %35, %36 : vector<16x8xf32>
    %cst_16 = arith.constant 0.000000e+00 : f32
    %38 = vector.broadcast %cst_16 : f32 to vector<16x8xf32>
    %39 = arith.maximumf %37, %38 : vector<16x8xf32>
    %40 = tpu.concatenate %33, %39 in 0 : vector<16x8xf32>, vector<16x8xf32> -> vector<32x8xf32>
    %41 = arith.addf %3, %40 : vector<32x8xf32>
    %42 = vector.shape_cast %41 : vector<32x8xf32> to vector<1x32x8xf32>
    %cst_17 = arith.constant dense<0.000000e+00> : vector<1xf32>
    %43 = vector.multi_reduction <add>, %42, %cst_17 [1, 2] : vector<1x32x8xf32> to vector<1xf32>
    %44 = vector.shape_cast %43 : vector<1xf32> to vector<1x1x1xf32>
    %45 = vector.extract %44[0, 0, 0] : f32 from vector<1x1x1xf32>
    %46 = arith.mulf %41, %41 : vector<32x8xf32>
    %47 = vector.shape_cast %46 : vector<32x8xf32> to vector<1x32x8xf32>
    %cst_18 = arith.constant dense<0.000000e+00> : vector<1xf32>
    %48 = vector.multi_reduction <add>, %47, %cst_18 [1, 2] : vector<1x32x8xf32> to vector<1xf32>
    %49 = vector.shape_cast %48 : vector<1xf32> to vector<1x1x1xf32>
    %50 = vector.extract %49[0, 0, 0] : f32 from vector<1x1x1xf32>
    %cst_19 = arith.constant 3.906250e-03 : f32
    %51 = arith.mulf %45, %cst_19 : f32
    %cst_20 = arith.constant 3.906250e-03 : f32
    %52 = arith.mulf %50, %cst_20 : f32
    %53 = arith.mulf %51, %51 : f32
    %54 = arith.subf %52, %53 : f32
    %cst_21 = arith.constant 0.000000e+00 : f32
    %55 = arith.maximumf %54, %cst_21 : f32
    %56 = vector.broadcast %51 : f32 to vector<32x8xf32>
    %57 = arith.subf %41, %56 : vector<32x8xf32>
    %cst_22 = arith.constant 9.99999974E-6 : f32
    %58 = arith.addf %55, %cst_22 : f32
    %59 = math.rsqrt %58 : f32
    %60 = vector.broadcast %59 : f32 to vector<32x8xf32>
    %61 = arith.mulf %57, %60 : vector<32x8xf32>
    %c0_23 = arith.constant 0 : index
    %c0_24 = arith.constant 0 : index
    %c0_25 = arith.constant 0 : index
    %62 = vector.load %arg4[%c0_23, %c0_24, %c0_25] : memref<1x8x32xf32, #tpu.memory_space<vmem>>, vector<1x8x32xf32>
    %63 = vector.shape_cast %62 : vector<1x8x32xf32> to vector<8x32xf32>
    %cst_26 = arith.constant dense<0.000000e+00> : vector<32x32xf32>
    %64 = tpu.matmul %61, %63, %cst_26 {dimension_numbers = #tpu.dot_dimension_numbers<[1], [0], [0], [1], [0, 0, 1, 1], [], []>} : vector<32x8xf32>, vector<8x32xf32>, vector<32x32xf32> -> vector<32x32xf32>
    %c0_27 = arith.constant 0 : index
    %c0_28 = arith.constant 0 : index
    %c0_29 = arith.constant 0 : index
    %65 = vector.load %arg5[%c0_27, %c0_28, %c0_29] : memref<1x1x32xf32, #tpu.memory_space<vmem>>, vector<1x1x32xf32>
    %66 = vector.shape_cast %65 : vector<1x1x32xf32> to vector<1x32xf32>
    %67 = vector.broadcast %66 : vector<1x32xf32> to vector<32x32xf32>
    %68 = arith.addf %64, %67 : vector<32x32xf32>
    %cst_30 = arith.constant 0.000000e+00 : f32
    %69 = vector.broadcast %cst_30 : f32 to vector<32x32xf32>
    %70 = arith.maximumf %68, %69 : vector<32x32xf32>
    %c0_31 = arith.constant 0 : index
    %c0_32 = arith.constant 0 : index
    %c0_33 = arith.constant 0 : index
    %71 = vector.load %arg6[%c0_31, %c0_32, %c0_33] : memref<1x32x8xf32, #tpu.memory_space<vmem>>, vector<1x32x8xf32>
    %72 = vector.shape_cast %71 : vector<1x32x8xf32> to vector<32x8xf32>
    %cst_34 = arith.constant dense<0.000000e+00> : vector<32x8xf32>
    %73 = tpu.matmul %70, %72, %cst_34 {dimension_numbers = #tpu.dot_dimension_numbers<[1], [0], [0], [1], [0, 0, 1, 1], [], []>} : vector<32x32xf32>, vector<32x8xf32>, vector<32x8xf32> -> vector<32x8xf32>
    %c0_35 = arith.constant 0 : index
    %c0_36 = arith.constant 0 : index
    %c0_37 = arith.constant 0 : index
    %74 = vector.load %arg7[%c0_35, %c0_36, %c0_37] : memref<1x1x8xf32, #tpu.memory_space<vmem>>, vector<1x1x8xf32>
    %75 = vector.shape_cast %74 : vector<1x1x8xf32> to vector<1x8xf32>
    %76 = vector.broadcast %75 : vector<1x8xf32> to vector<32x8xf32>
    %77 = arith.addf %73, %76 : vector<32x8xf32>
    %78 = arith.addf %41, %77 : vector<32x8xf32>
    %c0_38 = arith.constant 0 : index
    %c0_39 = arith.constant 0 : index
    %79 = vector.load %arg11[%c0_38, %c0_39] : memref<32x8xf32, #tpu.memory_space<vmem>>, vector<32x8xf32>
    tpu.vector_store %arg11[%c0_38, %c0_39], %78 {strides = array<i32>} : memref<32x8xf32, #tpu.memory_space<vmem>>, vector<32x8xf32>,
    %c1_i32 = arith.constant 1 : i32
    %80 = arith.cmpi eq, %arg0, %c1_i32 : i32
    %81 = arith.extui %80 : i1 to i32
    %c0_i32_40 = arith.constant 0 : i32
    %82 = arith.cmpi ne, %81, %c0_i32_40 : i32
    scf.if %82 {
      %c0_41 = arith.constant 0 : index
      %c0_42 = arith.constant 0 : index
      %83 = vector.load %arg8[%c0_41, %c0_42] : memref<4x16xf32, #tpu.memory_space<vmem>>, vector<4x16xf32>
      %c0_43 = arith.constant 0 : index
      %c0_44 = arith.constant 0 : index
      %84 = vector.load %arg9[%c0_43, %c0_44] : memref<4x1xf32, #tpu.memory_space<vmem>>, vector<4x1xf32>
      %85 = vector.extract_strided_slice %78 {offsets = [0, 0], sizes = [16, 8], strides = [1, 1]} : vector<32x8xf32> to vector<16x8xf32>
      %cst_45 = arith.constant dense<0.000000e+00> : vector<4x8xf32>
      %86 = tpu.matmul %83, %85, %cst_45 {dimension_numbers = #tpu.dot_dimension_numbers<[1], [0], [0], [1], [0, 0, 1, 1], [], []>} : vector<4x16xf32>, vector<16x8xf32>, vector<4x8xf32> -> vector<4x8xf32>
      %87 = vector.broadcast %84 : vector<4x1xf32> to vector<4x8xf32>
      %88 = arith.addf %86, %87 : vector<4x8xf32>
      %89 = vector.extract_strided_slice %78 {offsets = [16, 0], sizes = [16, 8], strides = [1, 1]} : vector<32x8xf32> to vector<16x8xf32>
      %cst_46 = arith.constant dense<0.000000e+00> : vector<4x8xf32>
      %90 = tpu.matmul %83, %89, %cst_46 {dimension_numbers = #tpu.dot_dimension_numbers<[1], [0], [0], [1], [0, 0, 1, 1], [], []>} : vector<4x16xf32>, vector<16x8xf32>, vector<4x8xf32> -> vector<4x8xf32>
      %91 = vector.broadcast %84 : vector<4x1xf32> to vector<4x8xf32>
      %92 = arith.addf %90, %91 : vector<4x8xf32>
      %93 = tpu.concatenate %88, %92 in 0 : vector<4x8xf32>, vector<4x8xf32> -> vector<8x8xf32>
      %c0_47 = arith.constant 0 : index
      %c0_48 = arith.constant 0 : index
      %94 = vector.load %arg10[%c0_47, %c0_48] : memref<8x8xf32, #tpu.memory_space<vmem>>, vector<8x8xf32>
      tpu.vector_store %arg10[%c0_47, %c0_48], %93 {strides = array<i32>} : memref<8x8xf32, #tpu.memory_space<vmem>>, vector<8x8xf32>,
    } else {
    }
    return
  }
  func.func @transform_0(%arg0: i32) -> (i32, i32) {
    %c0_i32 = arith.constant 0 : i32
    %c0_i32_0 = arith.constant 0 : i32
    %c0_i32_1 = arith.constant 0 : i32
    return %c0_i32, %c0_i32_0 : i32, i32
  }
  func.func @transform_1(%arg0: i32) -> (i32, i32, i32) {
    %c0_i32 = arith.constant 0 : i32
    %c0_i32_0 = arith.constant 0 : i32
    %c0_i32_1 = arith.constant 0 : i32
    return %arg0, %c0_i32, %c0_i32_0 : i32, i32, i32
  }
  func.func @transform_2(%arg0: i32) -> (i32, i32, i32) {
    %c0_i32 = arith.constant 0 : i32
    %c0_i32_0 = arith.constant 0 : i32
    %c0_i32_1 = arith.constant 0 : i32
    return %arg0, %c0_i32, %c0_i32_0 : i32, i32, i32
  }
  func.func @transform_3(%arg0: i32) -> (i32, i32, i32) {
    %c0_i32 = arith.constant 0 : i32
    %c0_i32_0 = arith.constant 0 : i32
    %c0_i32_1 = arith.constant 0 : i32
    return %arg0, %c0_i32, %c0_i32_0 : i32, i32, i32
  }
  func.func @transform_4(%arg0: i32) -> (i32, i32, i32) {
    %c0_i32 = arith.constant 0 : i32
    %c0_i32_0 = arith.constant 0 : i32
    %c0_i32_1 = arith.constant 0 : i32
    return %arg0, %c0_i32, %c0_i32_0 : i32, i32, i32
  }
  func.func @transform_5(%arg0: i32) -> (i32, i32, i32) {
    %c0_i32 = arith.constant 0 : i32
    %c0_i32_0 = arith.constant 0 : i32
    %c0_i32_1 = arith.constant 0 : i32
    return %arg0, %c0_i32, %c0_i32_0 : i32, i32, i32
  }
  func.func @transform_6(%arg0: i32) -> (i32, i32, i32) {
    %c0_i32 = arith.constant 0 : i32
    %c0_i32_0 = arith.constant 0 : i32
    %c0_i32_1 = arith.constant 0 : i32
    return %arg0, %c0_i32, %c0_i32_0 : i32, i32, i32
  }
  func.func @transform_7(%arg0: i32) -> (i32, i32) {
    %c0_i32 = arith.constant 0 : i32
    %c0_i32_0 = arith.constant 0 : i32
    %c0_i32_1 = arith.constant 0 : i32
    return %c0_i32, %c0_i32_0 : i32, i32
  }
  func.func @transform_8(%arg0: i32) -> (i32, i32) {
    %c0_i32 = arith.constant 0 : i32
    %c0_i32_0 = arith.constant 0 : i32
    %c0_i32_1 = arith.constant 0 : i32
    return %c0_i32, %c0_i32_0 : i32, i32
  }
  func.func @transform_9(%arg0: i32) -> (i32, i32) {
    %c0_i32 = arith.constant 0 : i32
    %c0_i32_0 = arith.constant 0 : i32
    %c0_i32_1 = arith.constant 0 : i32
    return %c0_i32, %c0_i32_0 : i32, i32
  }
}

</mosaic_0001>

<bundles_post_ra>
// kernel: tpu_custom_call.1
= control target key start
LH: loop header
LB: loop body
LE: loop exit
PB: predicated region body
PF: predicated region fallthrough
CT: control target
= control target key end

     0   :  { %14 = vsyncpa [#allocation4], 0  ;;  %s1467_s30 = smov 0   ;;  %s1666_s0 = inlined_call_operand.vmem [shape: f32[32,8], index: 0, kind: input, shape index: {}]   ;;  %s1667_s1 = inlined_call_operand.vmem [shape: f32[2,16,16], index: 1, kind: input, shape index: {}]   ;;  %s1668_s2 = inlined_call_operand.vmem [shape: f32[2,16,1], index: 2, kind: input, shape index: {}]   ;;  %s1669_s3 = inlined_call_operand.vmem [shape: f32[2,8,32], index: 3, kind: input, shape index: {}]   ;;  %s1670_s4 = inlined_call_operand.vmem [shape: f32[2,1,32], index: 4, kind: input, shape index: {}]   ;;  %s1671_s5 = inlined_call_operand.vmem [shape: f32[2,32,8], index: 5, kind: input, shape index: {}]   ;;  %s1672_s6 = inlined_call_operand.vmem [shape: f32[2,1,8], index: 6, kind: input, shape index: {}]   ;;  %s1673_s7 = inlined_call_operand.vmem [shape: f32[4,16], index: 7, kind: input, shape index: {}]   ;;  %s1674_s8 = inlined_call_operand.vmem [shape: f32[4,1], index: 8, kind: input, shape index: {}]   ;;  %s1675_s9 = inlined_call_operand.hbm [shape: f32[8,8], index: 9, kind: output, shape index: {}]  }
   0x1 LB: > { %s1473_s10 = sadd.s32 4294967295, %s1408_s30   ;;  %p1200_p0 = scmp.ge.s32.totalorder %s1408_s30, 1  ;;  %s1408_s30 = sphi %s1467_s30, %s20_s30  }
   0x2   : > { %p328_p1 = scmp.lt.s32.totalorder %s1408_s30, 3 }
   0x4   : > { %p329_p2 = pnand %p1200_p0, %p328_p1 }
   0x5   : > { %p379_p3 = scmp.lt.s32.totalorder (!%p329_p2), %s1473_s10, 1  ;;  %p1208_p4 = scmp.ne.s32.totalorder (!%p329_p2), %s1473_s10, 0 }
   0x6   : > { %332 = sbr.rel (%p329_p2) target bundleno = 1509 (0x5e5), region = 56 }
   0xd   : > { %s1479_s11 = scalar_select %p379_p3, %s1473_s10, 1 }
   0xe   : > { %407 = sbr.rel (%p1208_p4) target bundleno = 21 (0x15), region = 60  ;;  %v408_v0 = vld [vmem:[%s1666_s0] sm:$0xff] (!%p1208_p4)  ;;  %vm412_vm0 = vcmask (!%p1208_p4), 64512   ;;  %v409_v1 = vld [vmem:[%s1666_s0 + $0x8] sm:$0xff] (!%p1208_p4)  ;;  %v410_v2 = vld [vmem:[%s1666_s0 + $0x10] sm:$0xff] (!%p1208_p4) }
   0xf   : > { %s1230_s12 = sshll.u32 %s1479_s11, 4  ;;  %s1205_s13 = sshll.u32 %s1479_s11, 3  ;;  %413 = vst.msk [vmem:[#allocation2] sm:$0xff] (!%p1208_p4), %vm412_vm0, %v408_v0  ;;  %414 = vst.msk [vmem:[#allocation2 + $0x8] sm:$0xff] (!%p1208_p4), %vm412_vm0, %v409_v1  ;;  %v411_v3 = vld [vmem:[%s1666_s0 + $0x18] sm:$0xff] (!%p1208_p4) }
  0x10   : > { %s1486_s16 = scalar_lea.vmem %s1667_s1, %s1230_s12  ;;  %s1491_s19 = scalar_lea.vmem %s1668_s2, %s1230_s12  ;;  %415 = vst.msk [vmem:[#allocation2 + $0x10] sm:$0xff] (!%p1208_p4), %vm412_vm0, %v410_v2  ;;  %416 = vst.msk [vmem:[#allocation2 + $0x18] sm:$0xff] (!%p1208_p4), %vm412_vm0, %v411_v3 }
  0x11   : > { %s1496_s22 = scalar_lea.vmem %s1669_s3, %s1205_s13  ;;  %s395_s25 = scalar_lea.vmem %s1670_s4, %s1479_s11 }
  0x12   : > { %s1232_s26 = sshll.u32 %s1479_s11, 5  ;;  %s403_s29 = scalar_lea.vmem %s1672_s6, %s1479_s11 }
  0x13   : > { %s1510_s17 = scalar_lea.vmem %s1671_s5, %s1232_s26 }
  0x15 PF: > { %vm421_vm1 = vcmask 64512   ;;  %v477_v39 = vld [vmem:[%s1486_s16] sm:$0xff]  ;;  %vm491_vm2 = vcmask 130048   ;;  %v1410_v42 = vmov 0   ;;  %v480_v43 = vld [vmem:[%s1491_s19 + $0x8] sm:$0xff]  ;;  %s1411_s18 = smov 0.0  }
  0x16   : > { %v1525_v4 = vld [vmem:[#allocation2] sm:$0xff]  ;;  %v1527_v5 = vld [vmem:[#allocation2 + $0x8] sm:$0xff]  ;;  %1264 = vmatprep.mubr.msk.f32.mxu0 %vm491_vm2, %v477_v39  ;;  %1271 = vmatprep.mubr.msk.f32.mxu1 %vm491_vm2, %v477_v39  ;;  %vm831_vm3 = vcmask 261120   ;;  %p1223_p5 = scmp.ne.s32.totalorder %s1473_s10, 1 }
  0x17   : > { %v1529_v6 = vld [vmem:[#allocation2 + $0x10] sm:$0xff]  ;;  %v1531_v7 = vld [vmem:[#allocation2 + $0x18] sm:$0xff]  ;;  %v422_v8 = vsel %vm421_vm1, %v1525_v4, 0.0  ;;  %v423_v9 = vsel %vm421_vm1, %v1527_v5, 0.0  ;;  %v438_v11 = vmul.f32 %v1525_v4, %v1525_v4  ;;  %v439_v13 = vmul.f32 %v1527_v5, %v1527_v5  ;;  %v479_v41 = vld [vmem:[%s1491_s19] sm:$0xff]  ;;  %1365 = vset.pattern.permute.xlu1 %v1410_v42  ;;  %1366 = vset.pattern.permute.xlu0 %v1410_v42 }
  0x18   : > { %v425_v10 = vsel %vm421_vm1, %v1529_v6, 0.0  ;;  %v424_v12 = vadd.f32 %v423_v9, %v422_v8  ;;  %v440_v14 = vmul.f32 %v1529_v6, %v1529_v6  ;;  %v427_v15 = vsel %vm421_vm1, %v1531_v7, 0.0  ;;  %483 = vperm.xlu1 %1365, %v479_v41   ;;  %v478_v58 = vld [vmem:[%s1486_s16 + $0x8] sm:$0xff] }
  0x19   : > { %v441_v16 = vmul.f32 %v1531_v7, %v1531_v7  ;;  %v442_v17 = vsel %vm421_vm1, %v438_v11, 0.0  ;;  %v443_v19 = vsel %vm421_vm1, %v439_v13, 0.0  ;;  %vm1413_vm4 = vmmov (!%p1223_p5), 0  }
  0x1a   : > { %v426_v18 = vadd.f32 %v425_v10, %v424_v12  ;;  %v445_v20 = vsel %vm421_vm1, %v440_v14, 0.0  ;;  %v444_v21 = vadd.f32 %v443_v19, %v442_v17  ;;  %vm1094_vm5 = vcmask (!%p1223_p5), 1043456  }
  0x1b   : > { %v447_v23 = vsel %vm421_vm1, %v441_v16, 0.0 }
  0x1c   : > { %v428_v22 = vadd.f32 %v427_v15, %v426_v18  ;;  %v446_v24 = vadd.f32 %v445_v20, %v444_v21  ;;  %488 = vperm.xlu1 %1365, %v480_v43  }
  0x1e   : > { %429 = vadd.xlane.f32.xlu0 %v428_v22  ;;  %v448_v25 = vadd.f32 %v447_v23, %v446_v24 }
  0x22   : > { %449 = vadd.xlane.f32.xlu0 %v448_v25 }
  0x97   : > { %v484_v59 = vpop.permute.xlu1 %483 }
  0x9b   : > { %v489_v60 = vpop.permute.xlu1 %488 }
  0xab   : > { %v430_v26 = vpop.xlane.xlu0 %429 }
  0xac   : > { %v431_v27 = vrot.slane %v430_v26, 4 }
  0xae   : > { %v432_v28 = vadd.f32 %v431_v27, %v430_v26 }
  0xaf   : > { %v450_v29 = vpop.xlane.xlu0 %449 }
  0xb0   : > { %v433_v30 = vrot.slane %v432_v28, 2  ;;  %v451_v31 = vrot.slane %v450_v29, 4 }
  0xb2   : > { %v452_v32 = vadd.f32 %v451_v31, %v450_v29  ;;  %v434_v33 = vadd.f32 %v433_v30, %v432_v28 }
  0xb4   : > { %v453_v34 = vrot.slane %v452_v32, 2  ;;  %v435_v35 = vrot.slane %v434_v33, 1 }
  0xb6   : > { %v436_v36 = vadd.f32 %v435_v35, %v434_v33  ;;  %v454_v37 = vadd.f32 %v453_v34, %v452_v32 }
  0xb8   : > { %1332 = vpush %v436_v36  ;;  %v455_v38 = vrot.slane %v454_v37, 1 }
  0xba   : > { %v456_v40 = vadd.f32 %v455_v38, %v454_v37 }
  0xbc   : > { %1334 = vpush %v456_v40  ;;  %v711_v40 = vld [vmem:[%s1496_s22] sm:$0xff] }
  0xe9   : > { %s1333_s27 = spop %1332 }
  0xea   : > { %s458_s28 = smul.f32 0.00390625, %s1333_s27 }
  0xec   : > { %s460_s14 = smul.f32 %s458_s28, %s458_s28  ;;  %v463_v46 = vstv %s458_s28 }
  0xed   : > { %s1335_s15 = spop %1334  ;;  %v464_v47 = vsub.f32 %v1525_v4, %v463_v46  ;;  %v465_v48 = vsub.f32 %v1527_v5, %v463_v46  ;;  %v466_v49 = vsub.f32 %v1529_v6, %v463_v46  ;;  %v467_v50 = vsub.f32 %v1531_v7, %v463_v46  ;;  %v820_v46 = vld [vmem:[%s1510_s17] sm:$0xff] }
  0xee   : > { %s459_s12 = smul.f32 0.00390625, %s1335_s15 }
  0xf0   : > { %s461_s13 = ssub.f32 %s459_s12, %s460_s14 }
  0xf2   : > { %s462_s20 = smax.f32 %s1411_s18, %s461_s13 }
  0xf3   : > { %s468_s21 = sadd.f32 1e-05, %s462_s20 }
  0xf5   : > { %v469_v44 = vstv %s468_s21 }
  0xf6   : > { %1367 = vrsqrt.f32 %v469_v44 }
 0x100   : > { %v1368_v45 = vpop.eup %1367 }
 0x101   : > { %1336 = vpush %v1368_v45 }
 0x132   : > { %s1337_s23 = spop %1336 }
 0x133   : > { %v472_v51 = vstv %s1337_s23 }
 0x134   : > { %v473_v52 = vmul.f32 %v472_v51, %v464_v47  ;;  %v474_v53 = vmul.f32 %v472_v51, %v465_v48  ;;  %v475_v54 = vmul.f32 %v472_v51, %v466_v49  ;;  %v476_v55 = vmul.f32 %v472_v51, %v467_v50  ;;  %v821_v47 = vld [vmem:[%s1510_s17 + $0x8] sm:$0xff] }
 0x135   : > { %v1318_v48 = vpack.c.bf16 %v821_v47, %v820_v46 }
 0x136   : > { %v1310_v56 = vpack.c.bf16 %v474_v53, %v473_v52  ;;  %v1314_v57 = vpack.c.bf16 %v476_v55, %v475_v54 }
 0x138   : > { %1311 = vmatprep.subr.bf16.mxu0 %v1310_v56  ;;  %1315 = vmatprep.subr.bf16.mxu1 %v1314_v57 }
 0x139   : > { %1313 = vmatpush3.bf16.msra.mxu0 %v1310_v56  ;;  %1317 = vmatpush3.bf16.msra.mxu1 %v1314_v57 }
 0x13a   : > { %1274 = vmatprep.subr.mxu0 %v711_v40  ;;  %1319 = vmatprep.subr.bf16.mxu1 %v1318_v48 }
 0x13c   : > { %1265 = vmatmul.mubr.msk.f32.vlgmr.msra.gmra.mrb[0].mxu0 %vm491_vm2, %v478_v58  ;;  %1272 = vmatmul.mubr.msk.f32.vlgmr.msra.gmra.mrb[0].mxu1 %vm491_vm2, %v478_v58 }
 0x13d   : > { %1275 = vmatpush3.msra.mxu0 %v711_v40  ;;  %1321 = vmatpush3.bf16.msra.mxu1 %v1318_v48 }
 0x20f   : > { %v1266_v61 = vpop.f32.mrb[0].mxu0  ;;  %v1273_v62 = vpop.f32.mrb[0].mxu1 }
 0x210   : > { %v570_v63 = vadd.f32 %v1266_v61, %v489_v60  ;;  %v647_v0 = vadd.f32 %v1273_v62, %v489_v60  ;;  %v564_v1 = vpop.f32.mrb[1].mxu0  ;;  %v641_v2 = vpop.f32.mrb[1].mxu1  ;;  %v822_v61 = vld [vmem:[%s1510_s17 + $0x10] sm:$0xff]  ;;  %v823_v62 = vld [vmem:[%s1510_s17 + $0x18] sm:$0xff] }
 0x211   : > { %v565_v3 = vadd.f32 %v564_v1, %v484_v59  ;;  %v642_v8 = vadd.f32 %v641_v2, %v484_v59 }
 0x212   : > { %v574_v9 = vmax.f32 %v570_v63, 0.0  ;;  %v651_v10 = vmax.f32 %v647_v0, 0.0  ;;  %v1322_v63 = vpack.c.bf16 %v823_v62, %v822_v61  ;;  %v1213_v0 = vld [vmem:[%s395_s25] ss:$0 sm:$0xff] }
 0x213   : > { %v573_v11 = vmax.f32 %v565_v3, 0.0  ;;  %v650_v12 = vmax.f32 %v642_v8, 0.0 }
 0x214   : > { %v1567_v13 = vadd.f32 %v574_v9, %v1527_v5  ;;  %v1570_v14 = vadd.f32 %v651_v10, %v1531_v7  ;;  %1323 = vmatprep.subr.bf16.mxu1 %v1322_v63 }
 0x215   : > { %v1573_v15 = vadd.f32 %v573_v11, %v1525_v4  ;;  %v1576_v16 = vadd.f32 %v650_v12, %v1529_v6  ;;  %1325 = vmatpush3.bf16.msra.mxu1 %v1322_v63 }
 0x216   : > { %v657_v17 = vsel %vm421_vm1, %v1567_v13, 0.0  ;;  %v673_v18 = vmul.f32 %v1567_v13, %v1567_v13  ;;  %v675_v21 = vmul.f32 %v1570_v14, %v1570_v14  ;;  %v661_v25 = vsel %vm421_vm1, %v1570_v14, 0.0 }
 0x217   : > { %v656_v19 = vsel %vm421_vm1, %v1573_v15, 0.0  ;;  %v672_v5 = vmul.f32 %v1573_v15, %v1573_v15  ;;  %v674_v7 = vmul.f32 %v1576_v16, %v1576_v16  ;;  %v659_v6 = vsel %vm421_vm1, %v1576_v16, 0.0 }
 0x218   : > { %v658_v4 = vadd.f32 %v657_v17, %v656_v19  ;;  %v677_v20 = vsel %vm421_vm1, %v673_v18, 0.0  ;;  %v681_v29 = vsel %vm421_vm1, %v675_v21, 0.0 }
 0x219   : > { %v676_v22 = vsel %vm421_vm1, %v672_v5, 0.0  ;;  %v679_v26 = vsel %vm421_vm1, %v674_v7, 0.0  ;;  %v1218_v7 = vld [vmem:[%s403_s29] ss:$0 sm:$0xff] }
 0x21a   : > { %v660_v23 = vadd.f32 %v659_v6, %v658_v4  ;;  %v678_v24 = vadd.f32 %v677_v20, %v676_v22 }
 0x21c   : > { %v662_v27 = vadd.f32 %v661_v25, %v660_v23  ;;  %v680_v28 = vadd.f32 %v679_v26, %v678_v24 }
 0x21e   : > { %663 = vadd.xlane.f32.xlu0 %v662_v27  ;;  %v682_v30 = vadd.f32 %v681_v29, %v680_v28 }
 0x220   : > { %683 = vadd.xlane.f32.xlu1 %v682_v30  ;;  %v1412_v30 = vmov (!%p1223_p5), 0.0|0.0  }
 0x221   : > { %1326 = vmatprep.subr.bf16.mxu0 (!%p1223_p5), %v1412_v30  ;;  %1329 = vmatprep.subr.bf16.mxu1 (!%p1223_p5), %v1412_v30 }
 0x2ab   : > { %v664_v31 = vpop.xlane.xlu0 %663 }
 0x2ac   : > { %v665_v32 = vrot.slane %v664_v31, 4 }
 0x2ad   : > { %v684_v33 = vpop.xlane.xlu1 %683 }
 0x2ae   : > { %v666_v34 = vadd.f32 %v665_v32, %v664_v31  ;;  %v685_v35 = vrot.slane %v684_v33, 4  ;;  %v942_v31 = vld [vmem:[%s1674_s8] sm:$0xf] (!%p1223_p5)  ;;  %v1415_v32 = vmov (!%p1223_p5), 0  }
 0x2af   : > { %1371 = vset.pattern.permute.xlu0 (!%p1223_p5), %v1415_v32 }
 0x2b0   : > { %v667_v36 = vrot.slane %v666_v34, 2  ;;  %v686_v37 = vadd.f32 %v685_v35, %v684_v33  ;;  %945 = vperm.xlu0 (!%p1223_p5), %1371, %v942_v31  }
 0x2b2   : > { %v668_v38 = vadd.f32 %v667_v36, %v666_v34  ;;  %v687_v39 = vrot.slane %v686_v37, 2 }
 0x2b4   : > { %v688_v41 = vadd.f32 %v687_v39, %v686_v37  ;;  %v669_v42 = vrot.slane %v668_v38, 1 }
 0x2b6   : > { %v670_v43 = vadd.f32 %v669_v42, %v668_v38  ;;  %v689_v44 = vrot.slane %v688_v41, 1 }
 0x2b8   : > { %1338 = vpush %v670_v43  ;;  %v690_v45 = vadd.f32 %v689_v44, %v688_v41 }
 0x2ba   : > { %1340 = vpush %v690_v45 }
 0x2e9   : > { %s1339_s16 = spop %1338 }
 0x2ea   : > { %s692_s19 = smul.f32 0.00390625, %s1339_s16 }
 0x2eb   : > { %s1341_s24 = spop %1340 }
 0x2ec   : > { %s694_s26 = smul.f32 %s692_s19, %s692_s19  ;;  %v697_v51 = vstv %s692_s19 }
 0x2ed   : > { %s693_s27 = smul.f32 0.00390625, %s1341_s24  ;;  %v698_v52 = vsub.f32 %v1573_v15, %v697_v51  ;;  %v699_v53 = vsub.f32 %v1567_v13, %v697_v51  ;;  %v700_v55 = vsub.f32 %v1576_v16, %v697_v51  ;;  %v701_v59 = vsub.f32 %v1570_v14, %v697_v51 }
 0x2ef   : > { %s695_s22 = ssub.f32 %s693_s27, %s694_s26 }
 0x2f1   : > { %s696_s28 = smax.f32 %s1411_s18, %s695_s22 }
 0x2f2   : > { %s702_s14 = sadd.f32 1e-05, %s696_s28 }
 0x2f4   : > { %v703_v49 = vstv %s702_s14 }
 0x2f5   : > { %1369 = vrsqrt.f32 %v703_v49 }
 0x2ff   : > { %v1370_v50 = vpop.eup %1369 }
 0x300   : > { %1342 = vpush %v1370_v50 }
 0x32f   : > { %v946_v33 = vpop.permute.xlu0 (!%p1223_p5), %945 }
 0x331   : > { %s1343_s15 = spop %1342 }
 0x332   : > { %v706_v54 = vstv %s1343_s15 }
 0x333   : > { %v707_v56 = vmul.f32 %v706_v54, %v698_v52  ;;  %v708_v57 = vmul.f32 %v706_v54, %v699_v53  ;;  %v709_v58 = vmul.f32 %v706_v54, %v700_v55  ;;  %v710_v60 = vmul.f32 %v706_v54, %v701_v59 }
 0x335   : > { %1276 = vmatprep.mubr.msk.f32.mxu0 %vm421_vm1, %v707_v56 }
 0x336   : > { %1277 = vmatmul.mubr.msk.f32.vlgmr.msra.gmra.mrb[2].mxu0 %vm421_vm1, %v708_v57 }
 0x337   : > { %1279 = vmatprep.mubr.msk.f32.mxu0 %vm421_vm1, %v709_v58 }
 0x33a   : > { %1280 = vmatmul.mubr.msk.f32.gmra.mrb[4].mxu0 %vm421_vm1, %v710_v60 }
 0x409   : > { %v1278_v1 = vpop.f32.mrb[2].mxu0 }
 0x40a   : > { %v803_v2 = vadd.f32 %v1278_v1, %v1213_v0  ;;  %v797_v3 = vpop.f32.mrb[3].mxu0 }
 0x40b   : > { %v798_v8 = vadd.f32 %v1213_v0, %v797_v3 }
 0x40c   : > { %v817_v11 = vmax.f32 %v803_v2, 0.0 }
 0x40d   : > { %v816_v9 = vmax.f32 %v798_v8, 0.0  ;;  %v1281_v10 = vpop.f32.mrb[4].mxu0 }
 0x40e   : > { %v813_v12 = vadd.f32 %v1281_v10, %v1213_v0  ;;  %v807_v17 = vpop.f32.mrb[5].mxu0 }
 0x40f   : > { %v808_v18 = vadd.f32 %v1213_v0, %v807_v17  ;;  %1290 = vmatprep.mubr.msk.f32.mxu1 %vm831_vm3, %v816_v9 }
 0x410   : > { %1291 = vmatmul.mubr.msk.f32.vlgmr.msra.gmra.mrb[2].mxu1 %vm831_vm3, %v817_v11  ;;  %v819_v5 = vmax.f32 %v813_v12, 0.0 }
 0x411   : > { %v818_v19 = vmax.f32 %v808_v18, 0.0 }
 0x413   : > { %1293 = vmatprep.mubr.msk.f32.mxu1 %vm831_vm3, %v818_v19 }
 0x414   : > { %1294 = vmatmul.mubr.msk.f32.gmra.mrb[4].mxu1 %vm831_vm3, %v819_v5 }
 0x4e3   : > { %v1292_v4 = vpop.f32.mrb[2].mxu1 }
 0x4e4   : > { %v916_v20 = vadd.f32 %v1292_v4, %v1218_v7  ;;  %v910_v6 = vpop.f32.mrb[3].mxu1 }
 0x4e5   : > { %v911_v21 = vadd.f32 %v1218_v7, %v910_v6 }
 0x4e6   : > { %v930_v22 = vadd.f32 %v916_v20, %v1567_v13 }
 0x4e7   : > { %v929_v23 = vadd.f32 %v911_v21, %v1573_v15  ;;  %v1295_v24 = vpop.f32.mrb[4].mxu1  ;;  %940 = sbr.rel (%p1223_p5) target bundleno = 1484 (0x5cc), region = 64 }
 0x4e8   : > { %934 = vst.msk [vmem:[#allocation2 + $0x8] sm:$0xff] %vm421_vm1, %v930_v22  ;;  %v926_v25 = vadd.f32 %v1295_v24, %v1218_v7  ;;  %v920_v26 = vpop.f32.mrb[5].mxu1 }
 0x4e9   : > { %933 = vst.msk [vmem:[#allocation2] sm:$0xff] %vm421_vm1, %v929_v23  ;;  %v921_v27 = vadd.f32 %v1218_v7, %v920_v26  ;;  %v1327_v13 = vpack.c.bf16 (!%p1223_p5), %v930_v22, %v929_v23 }
 0x4ea   : > { %v932_v28 = vadd.f32 %v926_v25, %v1570_v14  ;;  %v941_v14 = vld [vmem:[%s1673_s7] sm:$0xf] (!%p1223_p5) }
 0x4eb   : > { %v931_v29 = vadd.f32 %v921_v27, %v1576_v16  ;;  %1328 = vmatpush3.bf16.msra.mxu0 (!%p1223_p5), %v1327_v13  ;;  %v1414_v16 = vmov (!%p1223_p5), 0.0  }
 0x4ec   : > { %936 = vst.msk [vmem:[#allocation2 + $0x18] sm:$0xff] %vm421_vm1, %v932_v28  ;;  %1300 = vmatprep.mubr.msk.f32.mxu0 (!%p1223_p5), %vm1413_vm4, %v1414_v16  ;;  %1307 = vmatprep.mubr.msk.f32.mxu1 (!%p1223_p5), %vm1413_vm4, %v1414_v16 }
 0x4ed   : > { %935 = vst.msk [vmem:[#allocation2 + $0x10] sm:$0xff] %vm421_vm1, %v931_v29  ;;  %v1330_v15 = vpack.c.bf16 (!%p1223_p5), %v932_v28, %v931_v29 }
 0x4ee   : > { %1301 = vmatmul.mubr.msk.f32.vlgmr.msra.gmra.mrb[0].mxu0 %vm491_vm2, %v941_v14 }
 0x4ef   : > { %1331 = vmatpush3.bf16.msra.mxu1 %v1330_v15 }
 0x4f2   : > { %1308 = vmatmul.mubr.msk.f32.vlgmr.msra.gmra.mrb[0].mxu1 %vm491_vm2, %v941_v14 }
 0x5c1   : > { %v1017_v34 = vpop.f32.mrb[0].mxu0 }
 0x5c2   : > { %v1302_v38 = vpop.f32.mrb[1].mxu0  ;;  %v1018_v39 = vadd.f32 %v1017_v34, %v946_v33 }
 0x5c5   : > { %v1087_v35 = vpop.f32.mrb[0].mxu1 }
 0x5c6   : > { %v1088_v36 = vadd.f32 %v1087_v35, %v946_v33  ;;  %v1309_v37 = vpop.f32.mrb[1].mxu1 }
 0x5c8   : > { %v1092_v40 = vrot.slane %v1088_v36, 4 }
 0x5ca   : > { %v1095_v41 = vsel %vm1094_vm5, %v1018_v39, %v1092_v40 }
 0x5cb   : > { %1096 = vst.msk [vmem:[#allocation3] sm:$0xff] %vm421_vm1, %v1095_v41 }
 0x5cc PF: > { %p1348_p6 = scmp.eq.s32.totalorder %s1473_s10, 1  ;;  %s1416_s21 = smov [#allocation3]  }
 0x5cd   : > { %s1104_s23 = sshll.u32 %s1416_s21, 4  ;;  %s1105_s23 = int_to_ptr.vmem [resolvable:$true] %s1104_s23 }
 0x5ce   : > { %s1372_s16 = scalar_lea.vmem %s1105_s23, 128  ;;  %p1379_p10 = scmp.lt.s32.totalorder %s1105_s23, %s1105_s23 }
 0x5cf   : > { %p1373_p7 = scmp.ne.s32.totalorder %s1105_s23, %s1372_s16  ;;  %p1380_p11 = scmp.lt.s32.totalorder %s1372_s16, %s1372_s16 }
 0x5d1   : > { %p1374_p8 = pnand %p1373_p7, %p1348_p6  ;;  %p1381_p12 = por %p1380_p11, %p1379_p10 }
 0x5d3   : > { %p1375_p9 = pneg %p1374_p8 }
 0x5d5   : > { %p1382_p13 = pnand %p1381_p12, %p1375_p9 }
 0x5d7   : > { %1385 = shalt.err (!%p1382_p13)
}
 0x5d8   : > { %s1386_s26 = scalar_lea.hbm %s1675_s9, 128 }
 0x5d9   : > { %p1387_p0 = scmp.ne.s32.totalorder %s1675_s9, %s1386_s26  ;;  %p1392_p3 = scmp.lt.u32.totalorder %s1386_s26, %s1675_s9 }
 0x5db   : > { %p1388_p1 = pnand %p1387_p0, %p1348_p6 }
 0x5dd   : > { %p1389_p2 = pneg %p1388_p1 }
 0x5df   : > { %p1394_p4 = pnand %p1392_p3, %p1389_p2 }
 0x5e1   : > { %1397 = shalt.err (!%p1394_p4)
}
 0x5e2   : > { %1345 = dma.vmem_to_hbm [thread:$0]  (%p1348_p6), %s1105_s23, 128, %s1675_s9, [#allocation4]  }
 0x5e3   : > { %1403 = dma.done.wait (%p1348_p6), [#allocation4], 128  }
 0x5e4   : > { %1405 = vsyncadd (%p1348_p6), [#allocation4], 4294967168 }
 0x5e5 PF: > { %s20_s30 = sadd.s32 1, %s1408_s30  }
 0x5e6   : > { %p17_p5 = scmp.ge.s32.totalorder %s20_s30, 4  }
 0x5e8   :  { %19 = sbr.rel (!%p17_p5) target bundleno = 1 (0x1), region = 106 }
 0x5ef   :  { %1117 = vsyncpa [#allocation4], 1 }
 0x5f0   :  { %1119 = vsyncpa [#allocation4 + $0x1], 1 }

</bundles_post_ra>
